<compile_context>
chip_gen: v7x
topology: tpu7x:2x2x1
jax: 0.10.0
libtpu: 0.0.40
codegen_flags: <defaults>
</compile_context>

<pallas_src>
import functools

import jax
import jax.numpy as jnp
from jax.experimental import pallas as pl
from jax.experimental.pallas import tpu as pltpu


def _round_up(x: int, m: int) -> int:
    return (x + m - 1) // m * m


def _pick_tile(extent: int, cap: int = 1024) -> int:
    """Largest power-of-two multiple of 128 <= cap, not larger than the
    128-padded extent (so tiny problems don't get oversized tiles)."""
    padded = max(_round_up(extent, 128), 128)
    t = cap
    while t > 128 and t > padded:
        t //= 2
    return t


# --------------------------------------------------------------------------
# Kernel A: per-batch voxel coordinates + flattened voxel index (lane-dense).
# --------------------------------------------------------------------------
def _coords_kernel(points_ref, coords_ref, idx_ref, *, resolution, normalize, eps):
    r = resolution
    pts = points_ref[0].astype(jnp.float32)                       # [3, N]
    centered = pts - jnp.mean(pts, axis=1, keepdims=True)         # lane reduction
    if normalize:
        # per-point L2 norm over xyz without a sublane reduce (pure VPU).
        sq = (centered[0:1] * centered[0:1]
              + centered[1:2] * centered[1:2]
              + centered[2:3] * centered[2:3])                    # [1, N]
        denom = jnp.max(jnp.sqrt(sq), axis=1, keepdims=True) * 2.0 + eps
        norm_coords = centered / denom + 0.5
    else:
        norm_coords = (centered + 1.0) * 0.5
    vox = jnp.clip(norm_coords * r, 0.0, float(r - 1))            # [3, N]
    coords_ref[0] = vox.astype(coords_ref.dtype)

    rc = jnp.round(vox).astype(jnp.int32)                         # [3, N]
    idx_ref[0] = rc[0:1] * (r * r) + rc[1:2] * r + rc[2:3]        # [1, N]


# --------------------------------------------------------------------------
# Kernel B: tiled scatter-average via bf16 one-hot matmul.
# --------------------------------------------------------------------------
def _scatter_avg_kernel(feat_ref, idx_ref, out_ref, acc_ref, cnt_ref, *,
                        tile_v, tile_n, feat_resident):
    n = pl.program_id(2)

    @pl.when(n == 0)
    def _():
        acc_ref[...] = jnp.zeros_like(acc_ref)
        cnt_ref[...] = jnp.zeros_like(cnt_ref)

    n_off = pl.multiple_of(n * tile_n, 128)
    idx_row = idx_ref[0, :, pl.ds(n_off, tile_n)]                 # [1, tile_n] i32

    # One-hot only for the current (tile_v, tile_n) tile, kept minimal:
    # a scalar shift on the small idx row, then iota + compare + bf16 convert
    # over the tile (the idx row broadcasts along sublanes, which is cheap).
    rel = idx_row - pl.program_id(1) * tile_v                     # [1, tile_n]
    sub_ids = jax.lax.broadcasted_iota(jnp.int32, (tile_v, tile_n), 0)
    onehot_t = (rel == sub_ids).astype(jnp.bfloat16)              # [tile_v, tile_n]

    if feat_resident:
        feat_chunk = feat_ref[0, :, pl.ds(n_off, tile_n)]         # [C_in, tile_n]
    else:
        feat_chunk = feat_ref[0]                                  # [C_in, tile_n]
    feat_chunk = feat_chunk.astype(jnp.bfloat16)

    # Sums: A @ B^T with both operands contracting on their LAST dim (the
    # flash-attention Q.K^T pattern) -> no XLU transpose of the one-hot,
    # f32 accumulation on the MXU.
    acc_ref[...] += jax.lax.dot_general(
        feat_chunk, onehot_t,
        dimension_numbers=(((1,), (1,)), ((), ())),
        preferred_element_type=jnp.float32)

    # Counts: tiny (M=1) ones-row matmul against the same one-hot. MXU has
    # slack at small C and this avoids any wrapper-side ones-row concat.
    ones_row = jnp.ones((1, tile_n), jnp.bfloat16)
    cnt_ref[...] += jax.lax.dot_general(
        ones_row, onehot_t,
        dimension_numbers=(((1,), (1,)), ((), ())),
        preferred_element_type=jnp.float32)

    @pl.when(n == pl.num_programs(2) - 1)
    def _():
        # EUP reciprocal (approx): off the VALU path; ~1e-3 relative error,
        # well inside the bf16 feature-path tolerance. Empty voxels -> 0.
        inv = pl.reciprocal(jnp.maximum(cnt_ref[...], 1.0), approx=True)
        out_ref[0] = (acc_ref[...] * inv).astype(out_ref.dtype)


# --------------------------------------------------------------------------
# Wrapper
# --------------------------------------------------------------------------
def voxelization(features, points, resolution, normalize=False, eps=0.0,
                 feat_resident_budget_bytes=16 * 1024 * 1024):
    """features: [B, C, N] f32, points: [B, N, 3] f32.

    Returns (voxel_features [B, C, r, r, r], voxel_coords [B, 3, N]).
    Note: feature sums traverse bf16 on the MXU (f32 accumulation)."""
    B, C, N = features.shape
    assert points.shape == (B, N, 3)
    r = int(resolution)
    r3 = r * r * r

    # Matches the PyTorch forward's points.transpose(1, 2); everything after
    # this is lane-dense over N.
    points_t = jnp.transpose(points, (0, 2, 1)).astype(jnp.float32)    # [B, 3, N]

    coords_kernel = functools.partial(
        _coords_kernel, resolution=r, normalize=normalize, eps=eps)
    coords, idx = pl.pallas_call(
        coords_kernel,
        out_shape=(jax.ShapeDtypeStruct((B, 3, N), jnp.float32),
                   jax.ShapeDtypeStruct((B, 1, N), jnp.int32)),
        grid=(B,),
        in_specs=[pl.BlockSpec((1, 3, N), lambda b: (b, 0, 0))],
        out_specs=(pl.BlockSpec((1, 3, N), lambda b: (b, 0, 0)),
                   pl.BlockSpec((1, 1, N), lambda b: (b, 0, 0))),
        compiler_params=pltpu.CompilerParams(dimension_semantics=("parallel",)),
    )(points_t)

    # ---- tiled scatter-average ---------------------------------------------
    tile_n = _pick_tile(N)
    n_pad = _round_up(N, tile_n)
    tile_v = _pick_tile(r3)
    r3_pad = _round_up(r3, tile_v)
    c_in = _round_up(C, 8)           # keep the MXU M dim sublane-aligned

    feats_in = features.astype(jnp.float32)
    if c_in != C or n_pad != N:
        # Only pads when shapes are unaligned (no-op / elided otherwise), so
        # the common aligned case has no extra feature HBM round trip.
        feats_in = jnp.pad(feats_in, ((0, 0), (0, c_in - C), (0, n_pad - N)))
    if n_pad != N:
        # Padded points get voxel id -1: they never match any one-hot column.
        idx_in = jnp.pad(idx, ((0, 0), (0, 0), (0, n_pad - N)), constant_values=-1)
    else:
        idx_in = idx

    # Keep the whole feature row resident in VMEM per batch (read once per
    # batch instead of once per v-tile) unless that would blow the VMEM budget
    # (v7x has only 64 MiB physical VMEM); fall back to per-n-chunk blocks.
    feat_resident = (2 * c_in * n_pad * 4) <= feat_resident_budget_bytes
    if feat_resident:
        feat_spec = pl.BlockSpec((1, c_in, n_pad), lambda b, v, n: (b, 0, 0))
    else:
        feat_spec = pl.BlockSpec((1, c_in, tile_n), lambda b, v, n: (b, 0, n))
    idx_spec = pl.BlockSpec((1, 1, n_pad), lambda b, v, n: (b, 0, 0))

    scatter_kernel = functools.partial(
        _scatter_avg_kernel, tile_v=tile_v, tile_n=tile_n,
        feat_resident=feat_resident)

    flops = int(2 * B * (c_in + 1) * n_pad * r3_pad)
    bytes_accessed = int(B * (c_in * n_pad * 4 + n_pad * 4 + c_in * r3_pad * 4))

    avg = pl.pallas_call(
        scatter_kernel,
        out_shape=jax.ShapeDtypeStruct((B, c_in, r3_pad), jnp.float32),
        grid=(B, r3_pad // tile_v, n_pad // tile_n),
        in_specs=[feat_spec, idx_spec],
        out_specs=pl.BlockSpec((1, c_in, tile_v), lambda b, v, n: (b, 0, v)),
        scratch_shapes=[pltpu.VMEM((c_in, tile_v), jnp.float32),
                        pltpu.VMEM((1, tile_v), jnp.float32)],
        compiler_params=pltpu.CompilerParams(
            dimension_semantics=("parallel", "parallel", "arbitrary"),
            vmem_limit_bytes=40 * 1024 * 1024),
        cost_estimate=pl.CostEstimate(
            flops=flops, transcendentals=0, bytes_accessed=bytes_accessed),
    )(feats_in, idx_in)

    vox_feat = avg[:, :C, :r3].reshape(B, C, r, r, r)
    return vox_feat, coords


# --------------------------------------------------------------------------
# Pure-JAX reference mirroring the PyTorch module.
# --------------------------------------------------------------------------
def _reference(features, points, resolution, normalize=False, eps=0.0):
    B, C, N = features.shape
    R = int(resolution)
    pts_t = jnp.transpose(points, (0, 2, 1))                      # [B, 3, N]
    centered = pts_t - jnp.mean(pts_t, axis=2, keepdims=True)
    if normalize:
        norm = jnp.sqrt(jnp.sum(centered * centered, axis=1, keepdims=True))
        denom = jnp.max(norm, axis=2, keepdims=True) * 2.0 + eps
        norm_coords = centered / denom + 0.5
    else:
        norm_coords = (centered + 1.0) / 2.0
    coords = jnp.clip(norm_coords * R, 0.0, float(R - 1))         # [B, 3, N]
    rc = jnp.round(coords).astype(jnp.int32)
    idx = rc[:, 0] * R * R + rc[:, 1] * R + rc[:, 2]              # [B, N]
    onehot = jax.nn.one_hot(idx, R ** 3, dtype=jnp.float32)       # [B, N, R^3]
    sums = jnp.einsum('bcn,bnv->bcv', features, onehot)
    counts = jnp.sum(onehot, axis=1)[:, None, :]
    avg = (sums / jnp.maximum(counts, 1.0)).reshape(B, C, R, R, R)
    return avg, coords


if __name__ == "__main__":
    # Small shapes that still exercise the C / N / r^3 padding paths.
    B, C, N, R = 2, 5, 200, 5
    key = jax.random.PRNGKey(0)
    kf, kp = jax.random.split(key)
    features = jax.random.normal(kf, (B, C, N), dtype=jnp.float32)
    points = jax.random.uniform(kp, (B, N, 3), dtype=jnp.float32,
                                minval=-1.0, maxval=1.0)

    # normalize=False (module default), feature-resident path.
    vox_feat, vox_coords = voxelization(features, points, R)
    jax.block_until_ready((vox_feat, vox_coords))
    ref_feat, ref_coords = _reference(features, points, R)
    assert vox_feat.shape == (B, C, R, R, R)
    assert vox_coords.shape == (B, 3, N)
    assert jnp.allclose(vox_coords, ref_coords, atol=1e-4), "voxel coords mismatch"
    # features pass through bf16 on the MXU (f32 acc) + approx reciprocal.
    assert jnp.allclose(vox_feat, ref_feat, atol=3e-2, rtol=3e-2), \
        "voxel features mismatch"

    # normalize=True branch.
    vox_feat_n, vox_coords_n = voxelization(features, points, R,
                                            normalize=True, eps=1e-6)
    jax.block_until_ready((vox_feat_n, vox_coords_n))
    ref_feat_n, ref_coords_n = _reference(features, points, R,
                                          normalize=True, eps=1e-6)
    assert jnp.allclose(vox_coords_n, ref_coords_n, atol=1e-4), \
        "normalized voxel coords mismatch"
    assert jnp.allclose(vox_feat_n, ref_feat_n, atol=3e-2, rtol=3e-2), \
        "normalized voxel features mismatch"

    # Chunked (non-resident feature) fallback path (v7x VMEM-budget branch).
    vox_feat_c, _ = voxelization(features, points, R,
                                 feat_resident_budget_bytes=0)
    jax.block_until_ready(vox_feat_c)
    assert jnp.allclose(vox_feat_c, ref_feat, atol=3e-2, rtol=3e-2), \
        "chunked-path voxel features mismatch"

    print("KERNEL_OK")
</pallas_src>

<mosaic_0001>
module attributes {stable_mosaic.version = 11 : i64} {
  func.func @_coords_kernel(%arg0: i32, %arg1: memref<1x3x200xf32, #tpu.memory_space<vmem>>, %arg2: memref<1x3x200xf32, #tpu.memory_space<vmem>>, %arg3: memref<1x1x200xi32, #tpu.memory_space<vmem>>) attributes {dimension_semantics = [#tpu.dimension_semantics<parallel>], iteration_bounds = array<i64: 2>, scalar_prefetch = 0 : i64, scratch_operands = 0 : i64, tpu.core_type = #tpu.core_type<tc>, window_params = [{transform_indices = @transform_0, window_bounds = array<i64: 1, 3, 200>}, {transform_indices = @transform_1, window_bounds = array<i64: 1, 3, 200>}, {transform_indices = @transform_2, window_bounds = array<i64: 1, 1, 200>}]} {
    %c0 = arith.constant 0 : index
    %c0_0 = arith.constant 0 : index
    %c0_1 = arith.constant 0 : index
    %0 = vector.load %arg1[%c0, %c0_0, %c0_1] : memref<1x3x200xf32, #tpu.memory_space<vmem>>, vector<1x3x200xf32>
    %1 = vector.shape_cast %0 : vector<1x3x200xf32> to vector<3x200xf32>
    %cst = arith.constant dense<0.000000e+00> : vector<3xf32>
    %2 = vector.multi_reduction <add>, %1, %cst [1] : vector<3x200xf32> to vector<3xf32>
    %3 = vector.shape_cast %2 : vector<3xf32> to vector<3x1xf32>
    %cst_2 = arith.constant 2.000000e+02 : f32
    %4 = vector.broadcast %cst_2 : f32 to vector<3x1xf32>
    %5 = arith.divf %3, %4 : vector<3x1xf32>
    %6 = vector.broadcast %5 : vector<3x1xf32> to vector<3x200xf32>
    %7 = arith.subf %1, %6 : vector<3x200xf32>
    %cst_3 = arith.constant 1.000000e+00 : f32
    %8 = vector.broadcast %cst_3 : f32 to vector<3x200xf32>
    %9 = arith.addf %7, %8 : vector<3x200xf32>
    %cst_4 = arith.constant 5.000000e-01 : f32
    %10 = vector.broadcast %cst_4 : f32 to vector<3x200xf32>
    %11 = arith.mulf %9, %10 : vector<3x200xf32>
    %cst_5 = arith.constant 5.000000e+00 : f32
    %12 = vector.broadcast %cst_5 : f32 to vector<3x200xf32>
    %13 = arith.mulf %11, %12 : vector<3x200xf32>
    %cst_6 = arith.constant 0.000000e+00 : f32
    %cst_7 = arith.constant 4.000000e+00 : f32
    %14 = vector.broadcast %cst_6 : f32 to vector<3x200xf32>
    %15 = arith.maximumf %14, %13 : vector<3x200xf32>
    %16 = vector.broadcast %cst_7 : f32 to vector<3x200xf32>
    %17 = arith.minimumf %16, %15 : vector<3x200xf32>
    %c0_8 = arith.constant 0 : index
    %c0_9 = arith.constant 0 : index
    %c0_10 = arith.constant 0 : index
    %18 = vector.load %arg2[%c0_8, %c0_9, %c0_10] : memref<1x3x200xf32, #tpu.memory_space<vmem>>, vector<1x3x200xf32>
    %19 = vector.shape_cast %18 : vector<1x3x200xf32> to vector<3x200xf32>
    %20 = vector.shape_cast %17 : vector<3x200xf32> to vector<1x3x200xf32>
    tpu.vector_store %arg2[%c0_8, %c0_9, %c0_10], %20 {strides = array<i32>} : memref<1x3x200xf32, #tpu.memory_space<vmem>>, vector<1x3x200xf32>,
    %21 = math.roundeven %17 : vector<3x200xf32>
    %22 = arith.fptosi %21 : vector<3x200xf32> to vector<3x200xi32>
    %23 = vector.extract_strided_slice %22 {offsets = [0, 0], sizes = [1, 200], strides = [1, 1]} : vector<3x200xi32> to vector<1x200xi32>
    %c25_i32 = arith.constant 25 : i32
    %24 = vector.broadcast %c25_i32 : i32 to vector<1x200xi32>
    %25 = arith.muli %23, %24 : vector<1x200xi32>
    %26 = vector.extract_strided_slice %22 {offsets = [1, 0], sizes = [1, 200], strides = [1, 1]} : vector<3x200xi32> to vector<1x200xi32>
    %c5_i32 = arith.constant 5 : i32
    %27 = vector.broadcast %c5_i32 : i32 to vector<1x200xi32>
    %28 = arith.muli %26, %27 : vector<1x200xi32>
    %29 = arith.addi %25, %28 : vector<1x200xi32>
    %30 = vector.extract_strided_slice %22 {offsets = [2, 0], sizes = [1, 200], strides = [1, 1]} : vector<3x200xi32> to vector<1x200xi32>
    %31 = arith.addi %29, %30 : vector<1x200xi32>
    %c0_11 = arith.constant 0 : index
    %c0_12 = arith.constant 0 : index
    %c0_13 = arith.constant 0 : index
    %32 = vector.load %arg3[%c0_11, %c0_12, %c0_13] : memref<1x1x200xi32, #tpu.memory_space<vmem>>, vector<1x1x200xi32>
    %33 = vector.shape_cast %32 : vector<1x1x200xi32> to vector<1x200xi32>
    %34 = vector.shape_cast %31 : vector<1x200xi32> to vector<1x1x200xi32>
    tpu.vector_store %arg3[%c0_11, %c0_12, %c0_13], %34 {strides = array<i32>} : memref<1x1x200xi32, #tpu.memory_space<vmem>>, vector<1x1x200xi32>,
    return
  }
  func.func @transform_0(%arg0: i32) -> (i32, i32, i32) {
    %c0_i32 = arith.constant 0 : i32
    %c0_i32_0 = arith.constant 0 : i32
    %c0_i32_1 = arith.constant 0 : i32
    return %arg0, %c0_i32, %c0_i32_0 : i32, i32, i32
  }
  func.func @transform_1(%arg0: i32) -> (i32, i32, i32) {
    %c0_i32 = arith.constant 0 : i32
    %c0_i32_0 = arith.constant 0 : i32
    %c0_i32_1 = arith.constant 0 : i32
    return %arg0, %c0_i32, %c0_i32_0 : i32, i32, i32
  }
  func.func @transform_2(%arg0: i32) -> (i32, i32, i32) {
    %c0_i32 = arith.constant 0 : i32
    %c0_i32_0 = arith.constant 0 : i32
    %c0_i32_1 = arith.constant 0 : i32
    return %arg0, %c0_i32, %c0_i32_0 : i32, i32, i32
  }
}

</mosaic_0001>

<bundles_post_ra>
// kernel: tpu_custom_call.1
= control target key start
LH: loop header
LB: loop body
LE: loop exit
PB: predicated region body
PF: predicated region fallthrough
CT: control target
= control target key end

     0   :  { %8 = vsyncpa [#allocation3], 0  ;;  %s572_s0 = inlined_call_operand.vmem [shape: f32[2,3,200], index: 0, kind: input, shape index: {}]   ;;  %s573_s1 = inlined_call_operand.vmem [shape: f32[2,3,200], index: 1, kind: output, shape index: {0}]   ;;  %s574_s2 = inlined_call_operand.hbm [shape: s32[2,1,200], index: 2, kind: output, shape index: {1}]  }
   0x1   :  { %10 = vsyncpa [#allocation3 + $0x1], 0  ;;  %s467_s9 = smov 0   ;;  %s469_s10 = smov 0  }
   0x2   :  { %s471_s11 = smov 0   ;;  %s473_s12 = smov 0  }
   0x3 LB: > { %s488_s13 = sadd.s32 4294967295, %s447_s12   ;;  %s321_s14 = sadd.s32 4294967294, %s447_s12   ;;  %s447_s12 = sphi %s473_s12, %s580_s12   ;;  %s443_s11 = sphi %s471_s11, %s579_s11   ;;  %s439_s10 = sphi %s469_s10, %s578_s10   ;;  %s435_s9 = sphi %s467_s9, %s577_s9  }
   0x4   : > { %s492_s15 = sadd.s32 1, %s447_s12   ;;  %s75_s16 = sadd.s32 1, %s443_s11 }
   0x5   : > { %s72_s17 = ssub.s32 %s447_s12, %s492_s15  ;;  %p85_p0 = scmp.ne.s32.totalorder %s443_s11, %s439_s10 }
   0x6   : > { %p73_p1 = scmp.eq.s32.totalorder %s72_s17, 0  ;;  %p86_p2 = scmp.eq.s32.totalorder %s488_s13, 1 }
   0x7   : > { %p91_p3 = scmp.ne.s32.totalorder %s439_s10, %s435_s9  ;;  %p92_p4 = scmp.eq.s32.totalorder %s321_s14, 1 }
   0x8   : > { %s503_s18 = scalar_select %p73_p1, %s443_s11, %s75_s16  }
   0x9   : > { %p505_p5 = por %p86_p2, %p85_p0  ;;  %p509_p6 = por %p92_p4, %p91_p3 }
   0xa   : > { %p324_p7 = scmp.ge.s32.totalorder %s447_s12, 1  ;;  %p118_p8 = scmp.lt.s32.totalorder %s447_s12, 3 }
   0xc   : > { %p119_p9 = pnand %p324_p7, %p118_p8 }
   0xd   : > { %p145_p10 = scmp.lt.s32.totalorder (!%p119_p9), %s488_s13, 1  ;;  %vm159_vm0 = vcmask (!%p119_p9), 1042432   ;;  %vm161_vm1 = vcmask (!%p119_p9), 583680   ;;  %v449_v5 = vmov (!%p119_p9), 839922192   ;;  %v172_v7 = vlaneseq (!%p119_p9)  ;;  %s142_s29 = sand.u32 (!%p119_p9), 1, %s439_s10  }
   0xe   : > { %122 = sbr.rel (%p119_p9) target bundleno = 217 (0xd9), region = 24  ;;  %v170_v6 = vunpack.c.l.s4 (!%p119_p9), %v449_v5  ;;  %vm183_vm2 = vcmask (!%p119_p9), 587780   ;;  %v450_v20 = vmov (!%p119_p9), 1966171168   ;;  %s325_s30 = sshll.u32 (!%p119_p9), %s142_s29, 1 }
   0xf   : > { %v173_v9 = vshrl.u32 (!%p119_p9), %v172_v7, 7  ;;  %vm184_vm3 = vmor (!%p119_p9), %vm183_vm2, %vm159_vm0  ;;  %v196_v21 = vunpack.c.l.s4 (!%p119_p9), %v450_v20  ;;  %s339_s3 = sshll.u32 (!%p119_p9), %s488_s13, 5  ;;  %s144_s4 = scalar_lea.vmem (!%p119_p9), [#allocation2], %s325_s30  ;;  %vm211_vm4 = vcmp.lt.s32.totalorder (!%p119_p9), %v172_v7, 200 }
  0x10   : > { %v171_v8 = vunpack.c.0.s8 (!%p119_p9), %v170_v6  ;;  %s237_s5 = sshll.u32 (!%p119_p9), %s144_s4, 4  ;;  %s530_s8 = scalar_lea.hbm (!%p119_p9), %s574_s2, %s339_s3  ;;  %s532_s5 = int_to_ptr.vmem [resolvable:$true] %s237_s5 }
  0x11   : > { %v197_v24 = vunpack.c.0.s8 (!%p119_p9), %v196_v21  ;;  %s220_s14 = scalar_lea.sflag (!%p119_p9), [#allocation3], %s142_s29  ;;  %s385_s16 = scalar_lea.vmem (!%p119_p9), %s532_s5, 32 }
  0x12   : > { %v174_v10 = vsub.s32 (!%p119_p9), %v171_v8, %v173_v9  ;;  %p386_p11 = scmp.ne.s32.totalorder (!%p119_p9), %s532_s5, %s385_s16 }
  0x13   : > { %v200_v29 = vsub.s32 (!%p119_p9), %v197_v24, %v173_v9 }
  0x14   : > { %p387_p12 = pnand (!%p119_p9), %p386_p11, %p505_p5 }
  0x15   : > { %s146_s21 = scalar_select %p145_p10, %s488_s13, 1 }
  0x16   : > { %p388_p13 = pneg %p387_p12  ;;  %s451_s13 = smov [#allocation2]  }
  0x17   : > { %s337_s22 = sshll.u32 %s146_s21, 3  ;;  %s389_s17 = sshll.u32 %s451_s13, 4  ;;  %s390_s17 = int_to_ptr.vmem [resolvable:$false] %s389_s17 }
  0x18   : > { %s149_s25 = scalar_lea.vmem %s572_s0, %s337_s22  ;;  %s154_s28 = scalar_lea.vmem %s573_s1, %s337_s22 }
  0x19   : > { %v155_v0 = vld [vmem:[%s149_s25] sm:$0x77]  ;;  %s391_s21 = scalar_lea.vmem %s390_s17, 64  ;;  %p392_p0 = scmp.lt.s32.totalorder %s532_s5, %s390_s17 }
  0x1a   : > { %v157_v1 = vcombine.high %v155_v0, %v155_v0  ;;  %v160_v2 = vsel %vm159_vm0, %v155_v0, 0.0  ;;  %p393_p1 = scmp.lt.s32.totalorder %s391_s21, %s385_s16 }
  0x1c   : > { %v162_v3 = vsel %vm161_vm1, %v157_v1, 0.0  ;;  %p394_p2 = por %p393_p1, %p392_p0 }
  0x1d   : > { %v163_v4 = vadd.f32 %v162_v3, %v160_v2 }
  0x1e   : > { %p395_p3 = pnand %p394_p2, %p388_p13 }
  0x1f   : > { %164 = vadd.xlane.f32.xlu0 %v163_v4 }
  0xac   : > { %v165_v11 = vpop.xlane.xlu0 %164 }
  0xad   : > { %v167_v12 = vmul.f32 0.005, %v165_v11 }
  0xaf   : > { %v175_v13 = vrot.slane %v167_v12, %v174_v10 }
  0xb1   : > { %v177_v14 = vsub.f32 %v155_v0, %v175_v13 }
  0xb3   : > { %v178_v15 = vadd.f32 1.0, %v177_v14 }
  0xb5   : > { %v179_v16 = vmul.f32 0.5, %v178_v15 }
  0xb7   : > { %v180_v17 = vmul.f32 5.0, %v179_v16 }
  0xb9   : > { %v181_v18 = vmax.f32 %v180_v17, 0.0 }
  0xbb   : > { %v182_v19 = vmin.f32 %v181_v18, 4.0 }
  0xbd   : > { %185 = vst.msk [vmem:[%s154_s28] sm:$0x77] %vm184_vm3, %v182_v19  ;;  %v342_v22 = vcvt.f32.s32 %v182_v19 }
  0xbf   : > { %v188_v23 = vmul.u32 5, %v342_v22  ;;  %v187_v25 = vmul.u32 25, %v342_v22  ;;  %v331_v28 = vrot.slane %v342_v22, 10 }
  0xc1   : > { %v330_v26 = vrot.slane %v188_v23, 9 }
  0xc3   : > { %v191_v27 = vadd.s32 %v330_v26, %v187_v25 }
  0xc5   : > { %v194_v30 = vadd.s32 %v331_v28, %v191_v27 }
  0xc7   : > { %v201_v31 = vrot.slane %v194_v30, %v200_v29 }
  0xc9   : > { %v208_v32 = vrot.slane %v201_v31, %v200_v29 }
  0xcb   : > { %213 = vst.msk [vmem:[%s144_s4] sm:$0x3] %vm211_vm4, %v208_v32 }
  0xcc   : > { %398 = shalt.err (!%p395_p3)
}
  0xcd   : > { %s399_s22 = scalar_lea.hbm %s530_s8, 32  ;;  %s403_s25 = scalar_lea.hbm %s574_s2, 64 }
  0xce   : > { %p400_p4 = scmp.ne.s32.totalorder %s530_s8, %s399_s22  ;;  %p404_p9 = scmp.lt.u32.totalorder %s530_s8, %s574_s2 }
  0xcf   : > { %p405_p10 = scmp.lt.u32.totalorder %s403_s25, %s399_s22  ;;  %p407_p12 = scmp.lt.u32.totalorder %s399_s22, %s530_s8 }
  0xd0   : > { %p401_p7 = pnand %p400_p4, %p505_p5 }
  0xd1   : > { %p406_p11 = por %p405_p10, %p404_p9 }
  0xd2   : > { %p402_p8 = pneg %p401_p7 }
  0xd3   : > { %p408_p13 = por %p407_p12, %p406_p11 }
  0xd5   : > { %p409_p0 = pnand %p408_p13, %p402_p8 }
  0xd7   : > { %412 = shalt.err (!%p409_p0)
}
  0xd8   : > { %343 = dma.vmem_to_hbm [thread:$0]  (%p505_p5), %s532_s5, 32, %s530_s8, %s220_s14  }
  0xd9 PF: > { %p349_p1 = scmp.ge.s32.totalorder %s447_s12, 2  ;;  %s257_s28 = sand.u32 1, %s435_s9  }
  0xda   : > { %s258_s29 = scalar_lea.sflag [#allocation3], %s257_s28 }
  0xdb   : > { %p346_p2 = pnand %p349_p1, %p509_p6 }
  0xdd   : > { %430 = dma.done.wait (!%p346_p2), %s258_s29, 32  }
  0xde   : > { %432 = vsyncadd (!%p346_p2), %s258_s29, 4294967264  ;;  %p13_p3 = scmp.ge.s32.totalorder %s492_s15, 4   ;;  %s577_s9 = smov %s439_s10 }
  0xdf   : > { %s578_s10 = smov %s443_s11  ;;  %s579_s11 = smov %s503_s18 }
  0xe0   : > { %s580_s12 = smov %s492_s15  ;;  %15 = sbr.rel (!%p13_p3) target bundleno = 3 (0x3), region = 71 }
  0xe7   :  { %263 = vsyncpa [#allocation3], 1 }
  0xe8   :  { %265 = vsyncpa [#allocation3 + $0x1], 1 }

</bundles_post_ra>
